<compile_context>
chip_gen: v6e
topology: v6e:2x2x1
jax: 0.10.0
libtpu: 0.0.40
codegen_flags: <defaults>
</compile_context>

<pallas_src>
import math

import jax
import jax.numpy as jnp
from jax.experimental import pallas as pl
from jax.experimental.pallas import tpu as pltpu


def _round_up(x, m):
    return ((x + m - 1) // m) * m


def _tpu_generation():
    """Best-effort host-side hardware query: (num_tensorcores, physical_vmem_bytes).

    Conservative defaults (1 TC, 128 MiB) if the query fails.
    """
    num_tc = 1
    vmem_phys = 128 * 1024 * 1024
    kind = ""
    try:
        kind = jax.devices()[0].device_kind.lower()
    except Exception:
        pass
    try:
        vmem_phys = int(pltpu.get_tpu_info().vmem_capacity_bytes)
    except Exception:
        if "v7" in kind:
            vmem_phys = 64 * 1024 * 1024
    if ("v7" in kind) or ("v4" in kind) or ("v5p" in kind):
        num_tc = 2  # megacore / dual-TC parts: "parallel" grid axes shard across cores
    return num_tc, vmem_phys


def _vmem_budget_and_limit(vmem_phys):
    if vmem_phys >= 128 * 1024 * 1024:          # v5e / v6e: plenty of headroom
        return 48 * 1024 * 1024, 64 * 1024 * 1024
    return 24 * 1024 * 1024, 32 * 1024 * 1024   # v7x: 64 MiB physical / 32 MiB scoped


def _vmem_bytes(tm, K, E, out_bytes):
    # Double-buffered lhs (bf16) + out tiles, plus (conservatively counted as
    # double-buffered) resident weight (bf16) and bias (f32) blocks.
    # TODO(synk): mark the resident weight/bias BlockSpecs pipeline_mode=pl.Buffered(1)
    # (constant index_map needs no double buffer) once single-buffer pipeline_mode is
    # verified on this jax version; that frees K*E*2 + E*4 bytes here.
    return 2 * (tm * K * 2 + tm * E * out_bytes) + 2 * (K * E * 2 + E * 4)


def _choose_tm(M, K, E, out_bytes, *, num_tc, vmem_budget):
    # Big tiles amortize the ~0.35us per-grid-step overhead and feed the 256-row MXU;
    # multiples of 16 keep bf16 LHS loads full-width (bf16 packs 16 sublane rows).
    tm = min(512, _round_up(M, 16))
    while tm > 16 and _vmem_bytes(tm, K, E, out_bytes) > vmem_budget:
        tm = _round_up(tm // 2, 16)
    # Only split a single full tile when the chip actually has >= 2 TensorCores;
    # on single-TC chips the grid is a serial loop and splitting is pure overhead.
    if num_tc >= 2 and pl.cdiv(M, tm) < num_tc and M > 16:
        tm = _round_up(pl.cdiv(M, num_tc), 16)
    return tm


def _patch_embed_kernel(p_ref, w_ref, b_ref, o_ref):
    # p_ref: (tm, K) bf16 patches tile, w_ref: (K, E) bf16 resident weight,
    # b_ref: (1, E) f32 resident bias, o_ref: (tm, E) lane-dense output.
    # MXU matmul with f32 accumulation; bias add in f32; single cast in the epilogue.
    acc = jnp.dot(p_ref[...], w_ref[...], preferred_element_type=jnp.float32)
    o_ref[...] = (acc + b_ref[...]).astype(o_ref.dtype)


def prepare_patch_embed_params(weight, bias, *, compute_dtype=jnp.bfloat16):
    """One-time (model-init) prep.

    [E,C,P,P] -> compute_dtype [K_pad, E] (lane-dense E; transpose hoisted out of the
    hot path; K zero-padded to a multiple of 128 so the LHS lane axis and MXU
    contraction are full-width) plus f32 [1, E] bias. `compute_dtype` is the
    on-the-wire dtype of patches and weight (bf16 default; pass jnp.float32 for
    exact-parity needs).
    """
    E = weight.shape[0]
    K = weight.shape[1] * weight.shape[2] * weight.shape[3]
    K_pad = max(_round_up(K, 128), 128)
    w_ke = weight.reshape(E, K).T.astype(compute_dtype)
    if K_pad != K:
        # Zero rows contribute 0 to the matmul -> exact same result.
        w_ke = jnp.pad(w_ke, ((0, K_pad - K), (0, 0)))
    b_1e = bias.reshape(1, E).astype(jnp.float32)
    return w_ke, b_1e


def patch_embedding(x, w_ke, b_1e, *, patch_size, out_dtype=None):
    """x: [B,C,H,W]; w_ke: [K_pad,E] (from prepare_patch_embed_params); b_1e: [1,E].

    Returns [B, num_patches, E] in `out_dtype` (default x.dtype; pass jnp.bfloat16 to
    halve HBM writeback and the largest VMEM tile -- accumulation stays f32).
    """
    B, C, H, W = x.shape
    P = patch_size
    Hp, Wp = H // P, W // P
    num_patches = Hp * Wp
    K = C * P * P
    K_pad, E = w_ke.shape
    assert K_pad == max(_round_up(K, 128), 128), (K_pad, K)
    out_dtype = x.dtype if out_dtype is None else out_dtype
    out_bytes = jnp.dtype(out_dtype).itemsize

    # Patch extraction (crop + cast + de-interleave + K pad) stays in XLA: the
    # W -> (Wp, P) lane-axis split is a cross-lane relayout with tiny (P-wide) minor
    # dims that lowers poorly inside VMEM. allow_input_fusion below lets XLA fuse
    # this producer into the custom call's operand rather than a separate launch.
    # Crop (no-op when divisible) matches Conv2d stride=kernel truncation semantics.
    xb = x[:, :, : Hp * P, : Wp * P].astype(w_ke.dtype)
    patches = xb.reshape(B, C, Hp, P, Wp, P)
    patches = jnp.transpose(patches, (0, 2, 4, 1, 3, 5)).reshape(B * num_patches, K)
    if K_pad != K:
        patches = jnp.pad(patches, ((0, 0), (0, K_pad - K)))

    M = B * num_patches
    num_tc, vmem_phys = _tpu_generation()
    vmem_budget, vmem_limit = _vmem_budget_and_limit(vmem_phys)
    tm = _choose_tm(M, K_pad, E, out_bytes, num_tc=num_tc, vmem_budget=vmem_budget)
    # The last tile may be partial: its padded LHS rows hold garbage, which is safe
    # ONLY because (a) the corresponding output rows are masked on writeback and
    # (b) there is no reduction grid axis that could consume them. Keep it that way.
    grid = (pl.cdiv(M, tm),)

    cost = pl.CostEstimate(
        flops=2 * M * K_pad * E,
        transcendentals=0,
        bytes_accessed=(
            M * K_pad * w_ke.dtype.itemsize
            + K_pad * E * w_ke.dtype.itemsize
            + E * 4
            + M * E * out_bytes
        ),
    )

    out = pl.pallas_call(
        _patch_embed_kernel,
        out_shape=jax.ShapeDtypeStruct((M, E), out_dtype),
        grid_spec=pltpu.PrefetchScalarGridSpec(
            num_scalar_prefetch=0,
            grid=grid,
            in_specs=[
                pl.BlockSpec((tm, K_pad), lambda i: (i, 0)),  # patches tile (bf16)
                pl.BlockSpec((K_pad, E), lambda i: (0, 0)),   # resident weight (no re-DMA)
                pl.BlockSpec((1, E), lambda i: (0, 0)),       # resident bias
            ],
            out_specs=pl.BlockSpec((tm, E), lambda i: (i, 0)),  # lane-dense E
        ),
        compiler_params=pltpu.CompilerParams(
            dimension_semantics=("parallel",),
            vmem_limit_bytes=vmem_limit,
            allow_input_fusion=[True, False, False],
        ),
        cost_estimate=cost,
    )(patches, w_ke, b_1e)

    return out.reshape(B, num_patches, E)


def _reference(x, weight, bias, patch_size):
    # Pure-JAX f32 reference (strided conv via patch extraction + einsum).
    B, C, H, W = x.shape
    E = weight.shape[0]
    P = patch_size
    Hp, Wp = H // P, W // P
    xs = x[:, :, : Hp * P, : Wp * P]
    patches = xs.reshape(B, C, Hp, P, Wp, P)
    patches = jnp.transpose(patches, (0, 2, 4, 1, 3, 5)).reshape(B, Hp * Wp, C * P * P)
    return jnp.einsum("bnk,ek->bne", patches, weight.reshape(E, -1)) + bias[None, None, :]


if __name__ == "__main__":
    pe = jax.jit(patch_embedding, static_argnames=("patch_size", "out_dtype"))
    root_key = jax.random.PRNGKey(0)

    # (B, C, IMG, P, E). Case 2 gives M = 49 patch rows -> exercises the pl.cdiv
    # grid and masked partial last tile; both cases exercise the K=48 -> 128 pad.
    cases = [(2, 3, 16, 4, 128), (1, 3, 28, 4, 128)]
    for case_idx, (B, C, IMG, P, E) in enumerate(cases):
        kx, kw, kb = jax.random.split(jax.random.fold_in(root_key, case_idx), 3)
        x = jax.random.normal(kx, (B, C, IMG, IMG), dtype=jnp.float32)

        # Deterministic Conv2d-style init (Kaiming-uniform-ish bounds).
        fan_in = C * P * P
        bound = 1.0 / math.sqrt(fan_in)
        weight = jax.random.uniform(kw, (E, C, P, P), jnp.float32, -bound, bound)
        bias = jax.random.uniform(kb, (E,), jnp.float32, -bound, bound)

        w_ke, b_1e = prepare_patch_embed_params(weight, bias)  # once, at "init"
        out = jax.block_until_ready(pe(x, w_ke, b_1e, patch_size=P))

        num_patches = (IMG // P) ** 2
        assert out.shape == (B, num_patches, E), out.shape
        assert out.dtype == x.dtype, out.dtype

        ref = _reference(x, weight, bias, P)
        # bf16-on-the-wire operands -> loose tolerance vs the pure-f32 reference.
        max_err = float(jnp.max(jnp.abs(out - ref)))
        assert jnp.allclose(out, ref, atol=5e-2, rtol=5e-2), (
            "mismatch vs reference", case_idx, max_err)

        # bf16-output path (f32 accumulation, cast in epilogue): smoke test.
        out_bf16 = jax.block_until_ready(
            pe(x, w_ke, b_1e, patch_size=P, out_dtype=jnp.bfloat16))
        assert out_bf16.shape == out.shape and out_bf16.dtype == jnp.bfloat16
        assert bool(jnp.all(jnp.isfinite(out_bf16.astype(jnp.float32))))

    print("KERNEL_OK")
</pallas_src>

<mosaic_0001>
module attributes {stable_mosaic.version = 11 : i64} {
  func.func @_patch_embed_kernel(%arg0: i32, %arg1: memref<32x128xbf16, #tpu.memory_space<vmem>>, %arg2: memref<128x128xbf16, #tpu.memory_space<vmem>>, %arg3: memref<1x128xf32, #tpu.memory_space<vmem>>, %arg4: memref<32x128xf32, #tpu.memory_space<vmem>>) attributes {dimension_semantics = [#tpu.dimension_semantics<parallel>], iteration_bounds = array<i64: 1>, scalar_prefetch = 0 : i64, scratch_operands = 0 : i64, tpu.core_type = #tpu.core_type<tc>, window_params = [{transform_indices = @transform_0, window_bounds = array<i64: 32, 128>}, {pipeline_mode = #tpu.pipeline_mode<synchronous>, transform_indices = @transform_1, window_bounds = array<i64: 128, 128>}, {pipeline_mode = #tpu.pipeline_mode<synchronous>, transform_indices = @transform_2, window_bounds = array<i64: 1, 128>}, {transform_indices = @transform_3, window_bounds = array<i64: 32, 128>}]} {
    %c0 = arith.constant 0 : index
    %c0_0 = arith.constant 0 : index
    %0 = vector.load %arg1[%c0, %c0_0] : memref<32x128xbf16, #tpu.memory_space<vmem>>, vector<32x128xbf16>
    %c0_1 = arith.constant 0 : index
    %c0_2 = arith.constant 0 : index
    %1 = vector.load %arg2[%c0_1, %c0_2] : memref<128x128xbf16, #tpu.memory_space<vmem>>, vector<128x128xbf16>
    %cst = arith.constant dense<0.000000e+00> : vector<32x128xf32>
    %2 = tpu.matmul %0, %1, %cst {dimension_numbers = #tpu.dot_dimension_numbers<[1], [0], [0], [1], [0, 0, 1, 1], [], []>} : vector<32x128xbf16>, vector<128x128xbf16>, vector<32x128xf32> -> vector<32x128xf32>
    %c0_3 = arith.constant 0 : index
    %c0_4 = arith.constant 0 : index
    %3 = vector.load %arg3[%c0_3, %c0_4] : memref<1x128xf32, #tpu.memory_space<vmem>>, vector<1x128xf32>
    %4 = vector.broadcast %3 : vector<1x128xf32> to vector<32x128xf32>
    %5 = arith.addf %2, %4 : vector<32x128xf32>
    %c0_5 = arith.constant 0 : index
    %c0_6 = arith.constant 0 : index
    %6 = vector.load %arg4[%c0_5, %c0_6] : memref<32x128xf32, #tpu.memory_space<vmem>>, vector<32x128xf32>
    tpu.vector_store %arg4[%c0_5, %c0_6], %5 {strides = array<i32>} : memref<32x128xf32, #tpu.memory_space<vmem>>, vector<32x128xf32>,
    return
  }
  func.func @transform_0(%arg0: i32) -> (i32, i32) {
    %c0_i32 = arith.constant 0 : i32
    %c0_i32_0 = arith.constant 0 : i32
    return %arg0, %c0_i32 : i32, i32
  }
  func.func @transform_1(%arg0: i32) -> (i32, i32) {
    %c0_i32 = arith.constant 0 : i32
    %c0_i32_0 = arith.constant 0 : i32
    %c0_i32_1 = arith.constant 0 : i32
    return %c0_i32, %c0_i32_0 : i32, i32
  }
  func.func @transform_2(%arg0: i32) -> (i32, i32) {
    %c0_i32 = arith.constant 0 : i32
    %c0_i32_0 = arith.constant 0 : i32
    %c0_i32_1 = arith.constant 0 : i32
    return %c0_i32, %c0_i32_0 : i32, i32
  }
  func.func @transform_3(%arg0: i32) -> (i32, i32) {
    %c0_i32 = arith.constant 0 : i32
    %c0_i32_0 = arith.constant 0 : i32
    return %arg0, %c0_i32 : i32, i32
  }
}

</mosaic_0001>

<bundles_post_ra>
// kernel: patch_embedding.2
= control target key start
LH: loop header
LB: loop body
LE: loop exit
PB: predicated region body
PF: predicated region fallthrough
CT: control target
= control target key end

     0   :  { %s416_s0 = inlined_call_operand.vmem [shape: bf16[128,128], index: 0, kind: input, shape index: {}]   ;;  %s417_s1 = inlined_call_operand.vmem [shape: f32[1,128], index: 1, kind: input, shape index: {}]   ;;  %s418_s2 = inlined_call_operand.vmem [shape: bf16[32,48], index: 2, kind: input, shape index: {}]   ;;  %s419_s3 = inlined_call_operand.<no memory space> [shape: bf16[], index: 3, kind: input, shape index: {}]   ;;  %s420_s4 = inlined_call_operand.hbm [shape: f32[32,128], index: 4, kind: output, shape index: {}]  }
   0x1   :  { %v9_v0 = vstv %s419_s3 }
   0x2   :  { %v10_v1 = vunpack.i.l.bf16 %v9_v0 }
   0x3   :  { %v316_v2 = vld [vmem:[%s416_s0 + $0x38] sm:$0xff]   ;;  %v33_v3 = vlaneseq  ;;  %v317_v4 = vld [vmem:[%s416_s0 + $0x30] sm:$0xff]   ;;  %v318_v5 = vld [vmem:[%s416_s0 + $0x28] sm:$0xff]  }
   0x4   :  { %292 = vmatprep.subr.bf16.mxu0 %v316_v2  ;;  %v319_v7 = vld [vmem:[%s416_s0 + $0x20] sm:$0xff]   ;;  %v269_v9 = vld [vmem:[%s418_s2 + $0x8] sm:$0xff]  }
   0x5   :  { %293 = vmatpush3.bf16.msra.mxu0 %v316_v2  ;;  %v34_v6 = vand.u32 127, %v33_v3  ;;  %v30_v8 = vld [vmem:[%s418_s2] sm:$0xff]  }
   0x6   :  { %294 = vmatprep.subr.bf16.mxu0 %v317_v4 }
   0x7   :  { %vm36_vm0 = vcmp.lt.s32.totalorder %v34_v6, 48 }
   0x9   :  { %295 = vmatpush3.bf16.msra.mxu0 %v317_v4 }
   0xa   :  { %296 = vmatprep.subr.bf16.mxu0 %v318_v5 }
   0xb   :  { %14 = vsyncpa [#allocation8], 0  ;;  %v31_v10 = vunpack.c.l.bf16 %v30_v8  ;;  %v53_v11 = vunpack.c.h.bf16 %v30_v8  ;;  %v76_v12 = vunpack.c.l.bf16 %v269_v9  ;;  %v99_v13 = vunpack.c.h.bf16 %v269_v9  ;;  %v320_v18 = vld [vmem:[%s416_s0 + $0x18] sm:$0xff]   ;;  %v321_v24 = vld [vmem:[%s416_s0 + $0x10] sm:$0xff]   ;;  %s349_s11 = smov [#allocation7]  }
   0xc   :  { %v348_v19 = vmov 0.0   ;;  %v322_v25 = vld [vmem:[%s416_s0 + $0x8] sm:$0xff]   ;;  %v323_v27 = vld [vmem:[%s416_s0] sm:$0xff]   ;;  %s257_s12 = sshll.u32 %s349_s11, 4  ;;  %s258_s12 = int_to_ptr.vmem [resolvable:$true] %s257_s12 }
   0xd   :  { %297 = vmatpush3.bf16.msra.mxu0 %v318_v5  ;;  %v37_v14 = vsel %vm36_vm0, %v31_v10, %v10_v1  ;;  %v59_v15 = vsel %vm36_vm0, %v53_v11, %v10_v1  ;;  %v82_v16 = vsel %vm36_vm0, %v76_v12, %v10_v1  ;;  %v105_v17 = vsel %vm36_vm0, %v99_v13, %v10_v1  ;;  %v271_v29 = vld [vmem:[%s417_s1] ss:$0 sm:$0xff]  ;;  %s326_s0 = scalar_lea.vmem %s258_s12, 512  ;;  %p331_p1 = scmp.lt.s32.totalorder %s258_s12, %s258_s12 }
   0xe   :  { %298 = vmatprep.subr.bf16.mxu0 %v319_v7  ;;  %v38_v20 = vpack.c.bf16 %v348_v19, %v37_v14  ;;  %v61_v21 = vpack.c.bf16 %v348_v19, %v59_v15  ;;  %v84_v22 = vpack.c.bf16 %v348_v19, %v82_v16  ;;  %v107_v23 = vpack.c.bf16 %v348_v19, %v105_v17  ;;  %p327_p0 = scmp.ne.s32.totalorder %s258_s12, %s326_s0  ;;  %p332_p2 = scmp.lt.s32.totalorder %s326_s0, %s326_s0 }
  0x10   :  { %41 = vst [vmem:[#allocation9] sm:$0xf] %v38_v20  ;;  %64 = vst [vmem:[#allocation9 + $0x4] sm:$0xf] %v61_v21  ;;  %p333_p3 = por %p332_p2, %p331_p1 }
  0x11   :  { %87 = vst [vmem:[#allocation9 + $0x8] sm:$0xf] %v84_v22  ;;  %110 = vst [vmem:[#allocation9 + $0xc] sm:$0xf] %v107_v23  ;;  %299 = vmatpush3.bf16.msra.mxu0 %v319_v7 }
  0x12   :  { %300 = vmatprep.subr.bf16.mxu0 %v320_v18  ;;  %p334_p4 = pnand %p333_p3, %p327_p0 }
  0x15   :  { %301 = vmatpush3.bf16.msra.mxu0 %v320_v18 }
  0x16   :  { %302 = vmatprep.subr.bf16.mxu0 %v321_v24 }
  0x17   :  { %v324_v26 = vld [vmem:[#allocation9] sm:$0xff]  }
  0x18   :  { %308 = vmatprep.mubr.bf16.mxu0 %v324_v26  ;;  %v325_v28 = vld [vmem:[#allocation9 + $0x8] sm:$0xff]  }
  0x19   :  { %303 = vmatpush3.bf16.msra.mxu0 %v321_v24 }
  0x1a   :  { %304 = vmatprep.subr.bf16.mxu0 %v322_v25 }
  0x1d   :  { %305 = vmatpush3.bf16.msra.mxu0 %v322_v25 }
  0x1e   :  { %306 = vmatprep.subr.bf16.mxu0 %v323_v27 }
  0x21   :  { %307 = vmatpush3.bf16.msra.mxu0 %v323_v27 }
  0x24   :  { %309 = vmatmul.mubr.bf16.vlgmr.msra.gmra.mxu0 %v325_v28 }
  0xe4   :  { %v310_v30 = vpop.f32.mrf.mxu0 }
  0xe5   :  { %v242_v31 = vadd.f32 %v310_v30, %v271_v29 }
  0xe6   :  { %v233_v32 = vpop.f32.mrf.mxu0 }
  0xe7   :  { %250 = vst [vmem:[#allocation7 + $0x10] sm:$0xff] %v242_v31  ;;  %v234_v33 = vadd.f32 %v271_v29, %v233_v32 }
  0xe8   :  { %v311_v34 = vpop.f32.mrf.mxu0 }
  0xe9   :  { %248 = vst [vmem:[#allocation7] sm:$0xff] %v234_v33  ;;  %v245_v35 = vadd.f32 %v311_v34, %v271_v29 }
  0xea   :  { %v236_v36 = vpop.f32.mrf.mxu0 }
  0xeb   :  { %251 = vst [vmem:[#allocation7 + $0x18] sm:$0xff] %v245_v35  ;;  %v237_v37 = vadd.f32 %v271_v29, %v236_v36 }
  0xed   :  { %249 = vst [vmem:[#allocation7 + $0x8] sm:$0xff] %v237_v37 }
  0xee   :  { %337 = shalt.err (!%p334_p4)
}
  0xef   :  { %s350_s1 = smov 128   ;;  %s351_s13 = smov 8  }
  0xf0   :  { %263 = dma.vmem_to_hbm [thread:$0]  %s258_s12, 512, %s420_s4, [#allocation8], %s350_s1, %s350_s1, %s351_s13  }
  0xf1   :  { %346 = dma.done.wait [#allocation8], 512  }
  0xf2   :  { %347 = vsyncadd [#allocation8], 4294966784 }
  0xf3   :  { %267 = vsyncpa [#allocation8], 1 }

</bundles_post_ra>
